<compile_context>
chip_gen: v5e
topology: v5e:2x2
jax: 0.10.0
libtpu: 0.0.40
codegen_flags: <defaults>
</compile_context>

<pallas_src>
import math
import jax
import jax.numpy as jnp
from jax.experimental import pallas as pl
from jax.experimental.pallas import tpu as pltpu


def make_pos_encoding(length: int, d_model: int) -> jnp.ndarray:
    """Exact recreation of the PyTorch PosEncoder.__init__ constant, shape (d_model, length).

    PyTorch reference (note `**` binds tighter than unary minus):
      freqs[i]  =  10000 ** (-i / d)          if i even
                = -(10000 ** ((1 - i) / d))   if i odd
      phases[i] =  0 if i even else pi / 2
      pe        =  sin(pos * freqs + phases)
    """
    i = jnp.arange(d_model, dtype=jnp.float32)
    even = (jnp.arange(d_model) % 2) == 0
    freqs = jnp.where(
        even,
        10000.0 ** (-i / d_model),
        -(10000.0 ** ((1.0 - i) / d_model)),
    )[:, None]                                             # (d_model, 1)
    phases = jnp.where(even, 0.0, math.pi / 2.0)[:, None].astype(jnp.float32)
    pos = jnp.arange(length, dtype=jnp.float32)[None, :]   # (1, length)
    return jnp.sin(pos * freqs + phases)                   # (d_model, length)


# ----------------------------------------------------------------------------- kernels

def _add_pe_3d_kernel(x_ref, pe_ref, o_ref):
    # x_ref / o_ref: (b_tile, d_tile, l_tile); pe_ref: (d_tile, l_tile) broadcast over batch.
    o_ref[...] = x_ref[...] + pe_ref[...]


def _add_pe_flat_kernel(x_ref, pe_ref, o_ref):
    # x_ref / o_ref: (b_tile, f_tile); pe_ref: (1, f_tile) broadcast over batch.
    o_ref[...] = x_ref[...] + pe_ref[...]


# ----------------------------------------------------------------------------- tiling

def _round_down(x: int, m: int) -> int:
    return (x // m) * m


def _fit_tile(dim: int, align: int, max_elems: int) -> int:
    """Tile for one dim: the full dim if it fits the budget (always a legal block),
    otherwise the largest multiple of `align` <= max_elems (>= align).  Remainders are
    handled by cdiv grids / partial tail blocks, never by blowing up the block."""
    if dim <= max_elems or dim <= align:
        return dim
    return max(align, _round_down(min(dim, max_elems), align))


def _vmem_capacity_bytes() -> int:
    try:
        return int(pltpu.get_tpu_info().vmem_capacity_bytes)
    except Exception:
        return 64 << 20  # conservative fallback (v7x-sized VMEM)


# ----------------------------------------------------------------------------- wrapper

def pos_encoder(x: jnp.ndarray, pos_encoding: jnp.ndarray) -> jnp.ndarray:
    """x: (B, d_model, length) (or (d_model, length)); returns x + pos_encoding."""
    squeeze_batch = False
    if x.ndim == 2:
        x = x[None]
        squeeze_batch = True
    b, d, L = x.shape
    assert pos_encoding.shape == (d, L)
    pe = pos_encoding.astype(x.dtype)

    itemsize = jnp.dtype(x.dtype).itemsize
    sub_align = {4: 8, 2: 16, 1: 32}.get(itemsize, 8)

    # Generation-aware per-block budget: 4 MiB on 128-MiB-VMEM chips (v5e/v6e), 2 MiB on
    # 64-MiB v7x.  3 streams x 2 buffers -> <= 24 MiB live, within the 32 MiB limit below.
    vmem_cap = _vmem_capacity_bytes()
    block_budget = (4 << 20) if vmem_cap >= (100 << 20) else (2 << 20)
    vmem_limit = 32 << 20

    cost = pl.CostEstimate(
        flops=b * d * L,
        transcendentals=0,
        bytes_accessed=(2 * b * d * L + d * L) * itemsize,
    )

    def cparams(ndims):
        # Pure elementwise: every grid point writes a distinct output block, so every axis
        # is safely "parallel" (lets v7x shard the batch axis across its 2 TensorCores).
        return pltpu.CompilerParams(
            dimension_semantics=("parallel",) * ndims,
            vmem_limit_bytes=vmem_limit,
        )

    lane_dense = (L >= 128) and (L % 128 == 0)

    if lane_dense:
        # ---- 3-D path: (b_tile, d_tile, l_tile) blocks, PE resident across batch ----
        dl_bytes = d * L * itemsize
        if b * dl_bytes <= block_budget:
            b_tile, d_tile, l_tile = b, d, L
        elif dl_bytes <= block_budget:
            # whole (d, L) slab fits: batch-block to amortize per-step overhead
            d_tile, l_tile = d, L
            b_tile = min(b, max(1, block_budget // dl_bytes))
        else:
            b_tile = 1
            row_bytes = L * itemsize
            if sub_align * row_bytes <= block_budget:
                # prefer full-length rows (one contiguous DMA per d-row), shrink d_tile
                l_tile = L
                d_tile = _fit_tile(d, sub_align, block_budget // row_bytes)
            else:
                l_tile = _fit_tile(L, 128, max(128, block_budget // (sub_align * itemsize)))
                d_tile = _fit_tile(d, sub_align,
                                   max(sub_align, block_budget // (l_tile * itemsize)))

        grid = (pl.cdiv(d, d_tile), pl.cdiv(L, l_tile), pl.cdiv(b, b_tile))

        out = pl.pallas_call(
            _add_pe_3d_kernel,
            out_shape=jax.ShapeDtypeStruct((b, d, L), x.dtype),
            grid_spec=pltpu.PrefetchScalarGridSpec(
                num_scalar_prefetch=0,
                # batch innermost; the PE index_map ignores it -> PE tile DMA'd once per
                # (d, l) tile and reused across the batch loop.
                grid=grid,
                in_specs=[
                    pl.BlockSpec((b_tile, d_tile, l_tile), lambda di, li, bi: (bi, di, li)),
                    pl.BlockSpec((d_tile, l_tile), lambda di, li, bi: (di, li)),
                ],
                out_specs=pl.BlockSpec(
                    (b_tile, d_tile, l_tile), lambda di, li, bi: (bi, di, li)
                ),
            ),
            compiler_params=cparams(3),
            cost_estimate=cost,
        )(x, pe)
    else:
        # ---- ragged-length path: flatten (d, L) -> F so stores stay lane-dense ----
        F = d * L
        x2 = x.reshape(b, F)     # contiguous reshape, free
        pe2 = pe.reshape(1, F)

        if b * F * itemsize <= block_budget:
            b_tile, f_tile = b, F
        else:
            if b <= sub_align:
                b_tile = b                                   # full-extent batch block
            else:
                max_b = max(1, block_budget // (F * itemsize))
                b_tile = max(sub_align,
                             _round_down(min(b, max(sub_align, max_b)), sub_align))
            f_tile = _fit_tile(F, 128, max(128, block_budget // (b_tile * itemsize)))

        grid = (pl.cdiv(F, f_tile), pl.cdiv(b, b_tile))

        out = pl.pallas_call(
            _add_pe_flat_kernel,
            out_shape=jax.ShapeDtypeStruct((b, F), x.dtype),
            grid_spec=pltpu.PrefetchScalarGridSpec(
                num_scalar_prefetch=0,
                grid=grid,
                in_specs=[
                    pl.BlockSpec((b_tile, f_tile), lambda fi, bi: (bi, fi)),
                    pl.BlockSpec((1, f_tile), lambda fi, bi: (0, fi)),
                ],
                out_specs=pl.BlockSpec((b_tile, f_tile), lambda fi, bi: (bi, fi)),
            ),
            compiler_params=cparams(2),
            cost_estimate=cost,
        )(x2, pe2).reshape(b, d, L)

    return out[0] if squeeze_batch else out


if __name__ == "__main__":
    key = jax.random.PRNGKey(0)

    # (B, d_model, length) cases:
    #  - lane-dense single-block, lane-dense batch-blocked, lane-dense (d,l)-tiled (on
    #    small-VMEM parts), and two ragged lengths exercising the flattened path.
    shapes = [
        (2, 32, 128),
        (4, 48, 256),
        (2, 1024, 1024),
        (2, 20, 100),
        (3, 40, 96),
    ]

    for (bsz, d_model, length) in shapes:
        key, sub = jax.random.split(key)
        x = jax.random.normal(sub, (bsz, d_model, length), dtype=jnp.float32)
        pe = make_pos_encoding(length, d_model)

        out = jax.block_until_ready(pos_encoder(x, pe))

        ref = x + pe[None, :, :]
        assert out.shape == (bsz, d_model, length)
        assert jnp.allclose(out, ref, atol=1e-6, rtol=1e-6), (
            f"mismatch vs reference at {(bsz, d_model, length)}"
        )

    print("KERNEL_OK")
</pallas_src>

<mosaic_0001>
module attributes {stable_mosaic.version = 11 : i64} {
  func.func @_add_pe_3d_kernel(%arg0: i32, %arg1: i32, %arg2: i32, %arg3: memref<2x32x128xf32, #tpu.memory_space<vmem>>, %arg4: memref<32x128xf32, #tpu.memory_space<vmem>>, %arg5: memref<2x32x128xf32, #tpu.memory_space<vmem>>) attributes {dimension_semantics = [#tpu.dimension_semantics<parallel>, #tpu.dimension_semantics<parallel>, #tpu.dimension_semantics<parallel>], iteration_bounds = array<i64: 1, 1, 1>, scalar_prefetch = 0 : i64, scratch_operands = 0 : i64, tpu.core_type = #tpu.core_type<tc>, window_params = [{transform_indices = @transform_0, window_bounds = array<i64: 2, 32, 128>}, {transform_indices = @transform_1, window_bounds = array<i64: 32, 128>}, {transform_indices = @transform_2, window_bounds = array<i64: 2, 32, 128>}]} {
    %c0 = arith.constant 0 : index
    %c0_0 = arith.constant 0 : index
    %c0_1 = arith.constant 0 : index
    %0 = vector.load %arg3[%c0, %c0_0, %c0_1] : memref<2x32x128xf32, #tpu.memory_space<vmem>>, vector<2x32x128xf32>
    %c0_2 = arith.constant 0 : index
    %c0_3 = arith.constant 0 : index
    %1 = vector.load %arg4[%c0_2, %c0_3] : memref<32x128xf32, #tpu.memory_space<vmem>>, vector<32x128xf32>
    %2 = vector.shape_cast %1 : vector<32x128xf32> to vector<1x32x128xf32>
    %3 = vector.broadcast %2 : vector<1x32x128xf32> to vector<2x32x128xf32>
    %4 = arith.addf %0, %3 : vector<2x32x128xf32>
    %c0_4 = arith.constant 0 : index
    %c0_5 = arith.constant 0 : index
    %c0_6 = arith.constant 0 : index
    %5 = vector.load %arg5[%c0_4, %c0_5, %c0_6] : memref<2x32x128xf32, #tpu.memory_space<vmem>>, vector<2x32x128xf32>
    tpu.vector_store %arg5[%c0_4, %c0_5, %c0_6], %4 {strides = array<i32>} : memref<2x32x128xf32, #tpu.memory_space<vmem>>, vector<2x32x128xf32>,
    return
  }
  func.func @transform_0(%arg0: i32, %arg1: i32, %arg2: i32) -> (i32, i32, i32) {
    %c0_i32 = arith.constant 0 : i32
    return %arg2, %arg0, %arg1 : i32, i32, i32
  }
  func.func @transform_1(%arg0: i32, %arg1: i32, %arg2: i32) -> (i32, i32) {
    %c0_i32 = arith.constant 0 : i32
    return %arg0, %arg1 : i32, i32
  }
  func.func @transform_2(%arg0: i32, %arg1: i32, %arg2: i32) -> (i32, i32, i32) {
    %c0_i32 = arith.constant 0 : i32
    return %arg2, %arg0, %arg1 : i32, i32, i32
  }
}

</mosaic_0001>

<bundles_post_ra>
// kernel: tpu_custom_call.1
= control target key start
LH: loop header
LB: loop body
LE: loop exit
PB: predicated region body
PF: predicated region fallthrough
CT: control target
= control target key end

     0   :  { %7 = vsyncpa [#allocation3], 0  ;;  %s213_s0 = inlined_call_operand.hbm [shape: f32[2,32,128], index: 0, kind: input, shape index: {}]   ;;  %s214_s1 = inlined_call_operand.hbm [shape: f32[32,128], index: 1, kind: input, shape index: {}]   ;;  %s215_s2 = inlined_call_operand.hbm [shape: f32[2,32,128], index: 2, kind: output, shape index: {}]  }
   0x1   :  { %8 = vsyncpa [#allocation6], 0 }
   0x2   :  { %9 = vsyncpa [#allocation4], 0  ;;  %s14_s11 = sshll.u32 %s213_s0, 4  ;;  %s175_s12 = smov [#allocation2]   ;;  %s15_s11 = int_to_ptr.hbm [resolvable:$true] %s14_s11 }
   0x3   :  { %s16_s13 = sshll.u32 %s175_s12, 4  ;;  %s27_s16 = sshll.u32 %s214_s1, 4  ;;  %s17_s13 = int_to_ptr.vmem [resolvable:$true] %s16_s13  ;;  %s28_s16 = int_to_ptr.hbm [resolvable:$true] %s27_s16 }
   0x4   :  { %s176_s17 = smov 128   ;;  %s177_s18 = smov 8  }
   0x5   :  { %22 = dma.hbm_to_vmem [thread:$0]  %s15_s11, 1024, %s17_s13, [#allocation3], %s176_s17, %s176_s17, %s177_s18  }
   0x6   :  { %s178_s19 = smov [#allocation5]  }
   0x7   :  { %s29_s20 = sshll.u32 %s178_s19, 4  ;;  %s30_s20 = int_to_ptr.vmem [resolvable:$true] %s29_s20 }
   0x8   :  { %35 = dma.hbm_to_vmem [thread:$0]  %s28_s16, 512, %s30_s20, [#allocation6], %s176_s17, %s176_s17, %s177_s18  }
   0x9   :  { %169 = dma.done.wait [#allocation3], 1024  }
   0xa   :  { %170 = vsyncadd [#allocation3], 4294966272 }
   0xb   :  { %171 = dma.done.wait [#allocation6], 512  }
   0xc   :  { %172 = vsyncadd [#allocation6], 4294966784  ;;  %v44_v0 = vld [vmem:[#allocation2] sm:$0xff]  ;;  %v45_v2 = vld [vmem:[#allocation2 + $0x8] sm:$0xff]  ;;  %s179_s0 = smov [#allocation7]   ;;  %s78_s23 = sshll.u32 %s215_s2, 4  ;;  %s79_s23 = int_to_ptr.hbm [resolvable:$true] %s78_s23 }
   0xd   :  { %v52_v1 = vld [vmem:[#allocation5] sm:$0xff]  ;;  %v53_v4 = vld [vmem:[#allocation5 + $0x8] sm:$0xff]  ;;  %v46_v5 = vld [vmem:[#allocation2 + $0x10] sm:$0xff]  ;;  %s76_s1 = sshll.u32 %s179_s0, 4  ;;  %s77_s1 = int_to_ptr.vmem [resolvable:$true] %s76_s1 }
   0xe   :  { %v56_v3 = vadd.f32 %v52_v1, %v44_v0  ;;  %v54_v6 = vld [vmem:[#allocation5 + $0x10] sm:$0xff]  ;;  %v57_v7 = vadd.f32 %v53_v4, %v45_v2  ;;  %v47_v9 = vld [vmem:[#allocation2 + $0x18] sm:$0xff]  ;;  %v48_v11 = vld [vmem:[#allocation2 + $0x20] sm:$0xff] }
   0xf   :  { %v58_v8 = vadd.f32 %v54_v6, %v46_v5  ;;  %v55_v10 = vld [vmem:[#allocation5 + $0x18] sm:$0xff]  ;;  %v60_v13 = vadd.f32 %v52_v1, %v48_v11  ;;  %v49_v14 = vld [vmem:[#allocation2 + $0x28] sm:$0xff]  ;;  %v50_v15 = vld [vmem:[#allocation2 + $0x30] sm:$0xff] }
  0x10   :  { %64 = vst [vmem:[#allocation7] sm:$0xff] %v56_v3  ;;  %v59_v12 = vadd.f32 %v55_v10, %v47_v9  ;;  %v51_v16 = vld [vmem:[#allocation2 + $0x38] sm:$0xff]  ;;  %v61_v17 = vadd.f32 %v53_v4, %v49_v14  ;;  %v62_v18 = vadd.f32 %v54_v6, %v50_v15 }
  0x11   :  { %65 = vst [vmem:[#allocation7 + $0x8] sm:$0xff] %v57_v7  ;;  %v63_v19 = vadd.f32 %v55_v10, %v51_v16 }
  0x12   :  { %66 = vst [vmem:[#allocation7 + $0x10] sm:$0xff] %v58_v8 }
  0x13   :  { %67 = vst [vmem:[#allocation7 + $0x18] sm:$0xff] %v59_v12 }
  0x14   :  { %68 = vst [vmem:[#allocation7 + $0x20] sm:$0xff] %v60_v13 }
  0x15   :  { %69 = vst [vmem:[#allocation7 + $0x28] sm:$0xff] %v61_v17 }
  0x16   :  { %70 = vst [vmem:[#allocation7 + $0x30] sm:$0xff] %v62_v18 }
  0x17   :  { %71 = vst [vmem:[#allocation7 + $0x38] sm:$0xff] %v63_v19 }
  0x18   :  { %84 = dma.vmem_to_hbm [thread:$0]  %s77_s1, 1024, %s79_s23, [#allocation4], %s176_s17, %s176_s17, %s177_s18  }
  0x19   :  { %173 = dma.done.wait [#allocation4], 1024  }
  0x1a   :  { %174 = vsyncadd [#allocation4], 4294966272 }
  0x1b   :  { %89 = vsyncpa [#allocation3], 1 }
  0x1c   :  { %90 = vsyncpa [#allocation6], 1 }
  0x1d   :  { %91 = vsyncpa [#allocation4], 1 }

</bundles_post_ra>
